<compile_context>
chip_gen: v7x
topology: tpu7x:2x2x1
jax: 0.10.0
libtpu: 0.0.40
codegen_flags: <defaults>
</compile_context>

<pallas_src>
import jax
import jax.numpy as jnp
from jax.experimental import pallas as pl
from jax.experimental.pallas import tpu as pltpu

_LANE = 128
_TARGET_FUSED_ROWS = 4096      # target fused M rows per grid step


def _round_up(x, m):
    return ((x + m - 1) // m) * m


def _cdiv(a, b):
    return (a + b - 1) // b


def _user_embedding_kernel(x_ref, w1_ref, w2_ref, w3_ref, b_ref, wa_ref, out_ref):
    TB, S, D = x_ref.shape
    Ep = w1_ref.shape[1]
    cdt = w1_ref.dtype            # matmul operand dtype (bf16 fast path or f32)

    # Fuse (TB, S) into one MXU M dimension; pure view when S % 8 == 0.
    # TODO(synk): if S % 8 != 0 Mosaic inserts a relayout copy here; pad S and
    # mask padded positions' scores to -inf before the softmax if that shows up.
    x = x_ref[...].reshape(TB * S, D)

    # --- MLP: three Linear + ReLU (MXU matmuls, f32 accumulation, f32 VPU) ---
    h = jnp.dot(x, w1_ref[...], preferred_element_type=jnp.float32) + b_ref[0:1, :]
    h = jnp.maximum(h, 0.0)
    h = jnp.dot(h.astype(cdt), w2_ref[...],
                preferred_element_type=jnp.float32) + b_ref[1:2, :]
    h = jnp.maximum(h, 0.0)
    h = jnp.dot(h.astype(cdt), w3_ref[...],
                preferred_element_type=jnp.float32) + b_ref[2:3, :]
    h = jnp.maximum(h, 0.0)                                      # (TB*S, Ep) f32

    h3 = h.reshape(TB, S, Ep)

    # --- AttentionLayer: scores -> softmax over seq -> weighted sum ---
    # 1-wide "linear" as a VPU multiply + XLU lane reduce (not an N=1 matmul).
    # Attention bias omitted: softmax over S cancels a constant per-row shift.
    scores = jnp.sum(h3 * wa_ref[...], axis=-1, keepdims=True)   # (TB, S, 1)
    m = jnp.max(scores, axis=1, keepdims=True)                   # (TB, 1, 1)
    e = jnp.exp(scores - m)
    attn = e / jnp.sum(e, axis=1, keepdims=True)                 # exact division
    out_ref[...] = jnp.sum(attn * h3, axis=1).astype(out_ref.dtype)


def user_embedding_forward(x, params, *, tb=None, matmul_dtype=jnp.bfloat16):
    """x: (B, S, D_in) float32 -> (B, E) float32."""
    B, S, D_in = x.shape
    E = params["w1"].shape[1]

    # Lane-pad E; for E > 128 align to the 256-wide v6e/v7x MXU when cheap.
    Ep = _round_up(E, _LANE)
    if E > _LANE and _round_up(E, 2 * _LANE) <= int(1.15 * E):
        Ep = _round_up(E, 2 * _LANE)

    md_bytes = jnp.dtype(matmul_dtype).itemsize

    try:
        vmem_cap = pltpu.get_tpu_info().vmem_capacity_bytes  # 64 MiB v7x, 128 MiB v5e/v6e
    except Exception:
        vmem_cap = 64 * 1024 * 1024

    def footprint(tb_):
        x_blk = 2 * tb_ * S * D_in * md_bytes           # double-buffered x stream
        wts = (D_in * Ep + 2 * Ep * Ep) * md_bytes       # single-buffered residents
        consts = 2 * (3 * Ep + Ep) * 4                   # biases + wa (f32)
        out_blk = 2 * tb_ * Ep * 4
        acts = 3 * tb_ * S * Ep * 4                      # f32 activation temporaries
        return x_blk + wts + consts + out_blk + acts

    # Batch tile: ~4096 fused M rows per step (amortize ~0.35us step overhead),
    # keep grid >= 2 for megacore when B allows, shrink until it fits VMEM.
    if tb is None:
        tb = max(1, _TARGET_FUSED_ROWS // max(S, 1))
    if tb >= B:
        tb = B                                           # full-dim batch block
    else:
        tb = max(8, (tb // 8) * 8)                       # sublane-aligned out block
    if B >= 16:
        tb = min(tb, _round_up(_cdiv(B, 2), 8))          # grid >= 2 (2 TCs on v7x)
    while tb > 8 and footprint(tb) > int(0.75 * vmem_cap):
        tb = max(8, ((tb // 2) // 8) * 8)
    grid = _cdiv(B, tb)                                  # ragged last block allowed

    vmem_limit = min(int(0.9 * vmem_cap),
                     max(32 * 1024 * 1024, int(1.5 * footprint(tb))))

    # No jnp.pad of x: feature axis uses the full-dim BlockSpec rule; only the
    # (tiny, reused) weights get zero-padded to a lane-dense Ep.
    xp = x.astype(matmul_dtype)
    w1 = jnp.pad(params["w1"], ((0, 0), (0, Ep - E))).astype(matmul_dtype)
    w2 = jnp.pad(params["w2"], ((0, Ep - E), (0, Ep - E))).astype(matmul_dtype)
    w3 = jnp.pad(params["w3"], ((0, Ep - E), (0, Ep - E))).astype(matmul_dtype)
    bias = jnp.pad(jnp.stack([params["b1"], params["b2"], params["b3"]], axis=0),
                   ((0, 0), (0, Ep - E))).astype(jnp.float32)         # (3, Ep)
    wa = jnp.pad(params["wa"].reshape(1, E),
                 ((0, 0), (0, Ep - E))).astype(jnp.float32)           # (1, Ep)
    # params["ba"] intentionally NOT passed (softmax-invariant constant shift).

    def build(single_buffer_residents):
        if single_buffer_residents:
            resident = lambda r, c: pl.BlockSpec((r, c), lambda b: (0, 0),
                                                 pipeline_mode=pl.Buffered(1))
        else:
            resident = lambda r, c: pl.BlockSpec((r, c), lambda b: (0, 0))
        return pl.pallas_call(
            _user_embedding_kernel,
            out_shape=jax.ShapeDtypeStruct((B, Ep), jnp.float32),
            grid_spec=pltpu.PrefetchScalarGridSpec(
                num_scalar_prefetch=0,
                grid=(grid,),
                in_specs=[
                    pl.BlockSpec((tb, S, D_in), lambda b: (b, 0, 0)),  # x streamed
                    resident(D_in, Ep),                                # w1
                    resident(Ep, Ep),                                  # w2
                    resident(Ep, Ep),                                  # w3
                    resident(3, Ep),                                   # packed biases
                    resident(1, Ep),                                   # wa row
                ],
                out_specs=pl.BlockSpec((tb, Ep), lambda b: (b, 0)),
            ),
            compiler_params=pltpu.CompilerParams(
                dimension_semantics=("parallel",),
                vmem_limit_bytes=vmem_limit),
        )

    try:
        out = build(True)(xp, w1, w2, w3, bias, wa)
    except Exception:
        # Fallback if this runtime rejects single-buffered resident blocks.
        out = build(False)(xp, w1, w2, w3, bias, wa)

    return out[:, :E]


def init_params(key, input_dim, embedding_dim):
    ks = jax.random.split(key, 8)
    scale_in = 1.0 / jnp.sqrt(input_dim)
    scale_e = 1.0 / jnp.sqrt(embedding_dim)
    return {
        "w1": jax.random.uniform(ks[0], (input_dim, embedding_dim), jnp.float32,
                                 -scale_in, scale_in),
        "b1": jax.random.uniform(ks[1], (embedding_dim,), jnp.float32, -scale_in, scale_in),
        "w2": jax.random.uniform(ks[2], (embedding_dim, embedding_dim), jnp.float32,
                                 -scale_e, scale_e),
        "b2": jax.random.uniform(ks[3], (embedding_dim,), jnp.float32, -scale_e, scale_e),
        "w3": jax.random.uniform(ks[4], (embedding_dim, embedding_dim), jnp.float32,
                                 -scale_e, scale_e),
        "b3": jax.random.uniform(ks[5], (embedding_dim,), jnp.float32, -scale_e, scale_e),
        "wa": jax.random.uniform(ks[6], (embedding_dim, 1), jnp.float32, -scale_e, scale_e),
        "ba": jax.random.uniform(ks[7], (1,), jnp.float32, -scale_e, scale_e),
    }


def reference_forward(x, params):
    h = x
    for wi, bi in (("w1", "b1"), ("w2", "b2"), ("w3", "b3")):
        h = jnp.maximum(h @ params[wi] + params[bi], 0.0)
    scores = h @ params["wa"] + params["ba"]            # (B, S, 1)
    attn = jax.nn.softmax(scores, axis=1)               # softmax over dim=1
    return jnp.sum(attn * h, axis=1)                    # (B, E)


if __name__ == "__main__":
    B, S, D_in, E = 2, 8, 16, 32

    key = jax.random.PRNGKey(0)
    k_x, k_p = jax.random.split(key)
    x = jax.random.normal(k_x, (B, S, D_in), jnp.float32)
    params = init_params(k_p, D_in, E)

    ref = jax.block_until_ready(reference_forward(x, params))

    # Exact-precision path (f32 matmul operands).
    out_f32 = jax.block_until_ready(
        user_embedding_forward(x, params, matmul_dtype=jnp.float32))
    assert out_f32.shape == (B, E)
    assert jnp.allclose(out_f32, ref, atol=2e-3, rtol=2e-3), "f32 path mismatch"

    # Default fast path: bf16 matmul operands, f32 accumulation / elementwise.
    out_bf16 = jax.block_until_ready(user_embedding_forward(x, params))
    assert out_bf16.shape == (B, E)
    assert jnp.allclose(out_bf16, ref, atol=3e-2, rtol=3e-2), "bf16 path mismatch"

    print("KERNEL_OK")
</pallas_src>

<mosaic_0001>
module attributes {stable_mosaic.version = 11 : i64} {
  func.func @_user_embedding_kernel(%arg0: i32, %arg1: memref<2x8x16xf32, #tpu.memory_space<vmem>>, %arg2: memref<16x128xf32, #tpu.memory_space<vmem>>, %arg3: memref<128x128xf32, #tpu.memory_space<vmem>>, %arg4: memref<128x128xf32, #tpu.memory_space<vmem>>, %arg5: memref<3x128xf32, #tpu.memory_space<vmem>>, %arg6: memref<1x128xf32, #tpu.memory_space<vmem>>, %arg7: memref<2x128xf32, #tpu.memory_space<vmem>>) attributes {dimension_semantics = [#tpu.dimension_semantics<parallel>], iteration_bounds = array<i64: 1>, scalar_prefetch = 0 : i64, scratch_operands = 0 : i64, tpu.core_type = #tpu.core_type<tc>, window_params = [{transform_indices = @transform_0, window_bounds = array<i64: 2, 8, 16>}, {pipeline_mode = #tpu.pipeline_mode<synchronous>, transform_indices = @transform_1, window_bounds = array<i64: 16, 128>}, {pipeline_mode = #tpu.pipeline_mode<synchronous>, transform_indices = @transform_2, window_bounds = array<i64: 128, 128>}, {pipeline_mode = #tpu.pipeline_mode<synchronous>, transform_indices = @transform_3, window_bounds = array<i64: 128, 128>}, {pipeline_mode = #tpu.pipeline_mode<synchronous>, transform_indices = @transform_4, window_bounds = array<i64: 3, 128>}, {pipeline_mode = #tpu.pipeline_mode<synchronous>, transform_indices = @transform_5, window_bounds = array<i64: 1, 128>}, {transform_indices = @transform_6, window_bounds = array<i64: 2, 128>}]} {
    %c0 = arith.constant 0 : index
    %c0_0 = arith.constant 0 : index
    %c0_1 = arith.constant 0 : index
    %0 = vector.load %arg1[%c0, %c0_0, %c0_1] : memref<2x8x16xf32, #tpu.memory_space<vmem>>, vector<2x8x16xf32>
    %1 = vector.shape_cast %0 : vector<2x8x16xf32> to vector<16x16xf32>
    %c0_2 = arith.constant 0 : index
    %c0_3 = arith.constant 0 : index
    %2 = vector.load %arg2[%c0_2, %c0_3] : memref<16x128xf32, #tpu.memory_space<vmem>>, vector<16x128xf32>
    %cst = arith.constant dense<0.000000e+00> : vector<16x128xf32>
    %3 = tpu.matmul %1, %2, %cst {dimension_numbers = #tpu.dot_dimension_numbers<[1], [0], [0], [1], [0, 0, 1, 1], [], []>} : vector<16x16xf32>, vector<16x128xf32>, vector<16x128xf32> -> vector<16x128xf32>
    %c0_4 = arith.constant 0 : index
    %c0_5 = arith.constant 0 : index
    %4 = vector.load %arg5[%c0_4, %c0_5] : memref<3x128xf32, #tpu.memory_space<vmem>>, vector<1x128xf32>
    %5 = vector.broadcast %4 : vector<1x128xf32> to vector<16x128xf32>
    %6 = arith.addf %3, %5 : vector<16x128xf32>
    %cst_6 = arith.constant 0.000000e+00 : f32
    %7 = vector.broadcast %cst_6 : f32 to vector<16x128xf32>
    %8 = arith.maximumf %6, %7 : vector<16x128xf32>
    %c0_7 = arith.constant 0 : index
    %c0_8 = arith.constant 0 : index
    %9 = vector.load %arg3[%c0_7, %c0_8] : memref<128x128xf32, #tpu.memory_space<vmem>>, vector<128x128xf32>
    %cst_9 = arith.constant dense<0.000000e+00> : vector<16x128xf32>
    %10 = tpu.matmul %8, %9, %cst_9 {dimension_numbers = #tpu.dot_dimension_numbers<[1], [0], [0], [1], [0, 0, 1, 1], [], []>} : vector<16x128xf32>, vector<128x128xf32>, vector<16x128xf32> -> vector<16x128xf32>
    %c1 = arith.constant 1 : index
    %c0_10 = arith.constant 0 : index
    %11 = vector.load %arg5[%c1, %c0_10] : memref<3x128xf32, #tpu.memory_space<vmem>>, vector<1x128xf32>
    %12 = vector.broadcast %11 : vector<1x128xf32> to vector<16x128xf32>
    %13 = arith.addf %10, %12 : vector<16x128xf32>
    %cst_11 = arith.constant 0.000000e+00 : f32
    %14 = vector.broadcast %cst_11 : f32 to vector<16x128xf32>
    %15 = arith.maximumf %13, %14 : vector<16x128xf32>
    %c0_12 = arith.constant 0 : index
    %c0_13 = arith.constant 0 : index
    %16 = vector.load %arg4[%c0_12, %c0_13] : memref<128x128xf32, #tpu.memory_space<vmem>>, vector<128x128xf32>
    %cst_14 = arith.constant dense<0.000000e+00> : vector<16x128xf32>
    %17 = tpu.matmul %15, %16, %cst_14 {dimension_numbers = #tpu.dot_dimension_numbers<[1], [0], [0], [1], [0, 0, 1, 1], [], []>} : vector<16x128xf32>, vector<128x128xf32>, vector<16x128xf32> -> vector<16x128xf32>
    %c2 = arith.constant 2 : index
    %c0_15 = arith.constant 0 : index
    %18 = vector.load %arg5[%c2, %c0_15] : memref<3x128xf32, #tpu.memory_space<vmem>>, vector<1x128xf32>
    %19 = vector.broadcast %18 : vector<1x128xf32> to vector<16x128xf32>
    %20 = arith.addf %17, %19 : vector<16x128xf32>
    %cst_16 = arith.constant 0.000000e+00 : f32
    %21 = vector.broadcast %cst_16 : f32 to vector<16x128xf32>
    %22 = arith.maximumf %20, %21 : vector<16x128xf32>
    %23 = vector.shape_cast %22 : vector<16x128xf32> to vector<2x8x128xf32>
    %c0_17 = arith.constant 0 : index
    %c0_18 = arith.constant 0 : index
    %24 = vector.load %arg6[%c0_17, %c0_18] : memref<1x128xf32, #tpu.memory_space<vmem>>, vector<1x128xf32>
    %25 = vector.shape_cast %24 : vector<1x128xf32> to vector<1x1x128xf32>
    %26 = vector.broadcast %25 : vector<1x1x128xf32> to vector<2x8x128xf32>
    %27 = arith.mulf %23, %26 : vector<2x8x128xf32>
    %cst_19 = arith.constant dense<0.000000e+00> : vector<2x8xf32>
    %28 = vector.multi_reduction <add>, %27, %cst_19 [2] : vector<2x8x128xf32> to vector<2x8xf32>
    %29 = vector.shape_cast %28 : vector<2x8xf32> to vector<2x8x1xf32>
    %cst_20 = arith.constant dense<0xFF800000> : vector<2x1xf32>
    %30 = vector.multi_reduction <maximumf>, %29, %cst_20 [1] : vector<2x8x1xf32> to vector<2x1xf32>
    %31 = vector.shape_cast %30 : vector<2x1xf32> to vector<2x1x1xf32>
    %32 = vector.broadcast %31 : vector<2x1x1xf32> to vector<2x8x1xf32>
    %33 = arith.subf %29, %32 : vector<2x8x1xf32>
    %34 = math.exp %33 : vector<2x8x1xf32>
    %cst_21 = arith.constant dense<0.000000e+00> : vector<2x1xf32>
    %35 = vector.multi_reduction <add>, %34, %cst_21 [1] : vector<2x8x1xf32> to vector<2x1xf32>
    %36 = vector.shape_cast %35 : vector<2x1xf32> to vector<2x1x1xf32>
    %37 = vector.broadcast %36 : vector<2x1x1xf32> to vector<2x8x1xf32>
    %38 = arith.divf %34, %37 : vector<2x8x1xf32>
    %39 = vector.broadcast %38 : vector<2x8x1xf32> to vector<2x8x128xf32>
    %40 = arith.mulf %39, %23 : vector<2x8x128xf32>
    %cst_22 = arith.constant dense<0.000000e+00> : vector<2x128xf32>
    %41 = vector.multi_reduction <add>, %40, %cst_22 [1] : vector<2x8x128xf32> to vector<2x128xf32>
    %c0_23 = arith.constant 0 : index
    %c0_24 = arith.constant 0 : index
    %42 = vector.load %arg7[%c0_23, %c0_24] : memref<2x128xf32, #tpu.memory_space<vmem>>, vector<2x128xf32>
    tpu.vector_store %arg7[%c0_23, %c0_24], %41 {strides = array<i32>} : memref<2x128xf32, #tpu.memory_space<vmem>>, vector<2x128xf32>,
    return
  }
  func.func @transform_0(%arg0: i32) -> (i32, i32, i32) {
    %c0_i32 = arith.constant 0 : i32
    %c0_i32_0 = arith.constant 0 : i32
    %c0_i32_1 = arith.constant 0 : i32
    return %arg0, %c0_i32, %c0_i32_0 : i32, i32, i32
  }
  func.func @transform_1(%arg0: i32) -> (i32, i32) {
    %c0_i32 = arith.constant 0 : i32
    %c0_i32_0 = arith.constant 0 : i32
    %c0_i32_1 = arith.constant 0 : i32
    return %c0_i32, %c0_i32_0 : i32, i32
  }
  func.func @transform_2(%arg0: i32) -> (i32, i32) {
    %c0_i32 = arith.constant 0 : i32
    %c0_i32_0 = arith.constant 0 : i32
    %c0_i32_1 = arith.constant 0 : i32
    return %c0_i32, %c0_i32_0 : i32, i32
  }
  func.func @transform_3(%arg0: i32) -> (i32, i32) {
    %c0_i32 = arith.constant 0 : i32
    %c0_i32_0 = arith.constant 0 : i32
    %c0_i32_1 = arith.constant 0 : i32
    return %c0_i32, %c0_i32_0 : i32, i32
  }
  func.func @transform_4(%arg0: i32) -> (i32, i32) {
    %c0_i32 = arith.constant 0 : i32
    %c0_i32_0 = arith.constant 0 : i32
    %c0_i32_1 = arith.constant 0 : i32
    return %c0_i32, %c0_i32_0 : i32, i32
  }
  func.func @transform_5(%arg0: i32) -> (i32, i32) {
    %c0_i32 = arith.constant 0 : i32
    %c0_i32_0 = arith.constant 0 : i32
    %c0_i32_1 = arith.constant 0 : i32
    return %c0_i32, %c0_i32_0 : i32, i32
  }
  func.func @transform_6(%arg0: i32) -> (i32, i32) {
    %c0_i32 = arith.constant 0 : i32
    %c0_i32_0 = arith.constant 0 : i32
    return %arg0, %c0_i32 : i32, i32
  }
}

module attributes {stable_mosaic.version = 11 : i64} {
  func.func @_user_embedding_kernel(%arg0: i32, %arg1: memref<2x8x16xf32, #tpu.memory_space<vmem>>, %arg2: memref<16x128xf32, #tpu.memory_space<vmem>>, %arg3: memref<128x128xf32, #tpu.memory_space<vmem>>, %arg4: memref<128x128xf32, #tpu.memory_space<vmem>>, %arg5: memref<3x128xf32, #tpu.memory_space<vmem>>, %arg6: memref<1x128xf32, #tpu.memory_space<vmem>>, %arg7: memref<2x128xf32, #tpu.memory_space<vmem>>) attributes {dimension_semantics = [#tpu.dimension_semantics<parallel>], iteration_bounds = array<i64: 1>, scalar_prefetch = 0 : i64, scratch_operands = 0 : i64, tpu.core_type = #tpu.core_type<tc>, window_params = [{transform_indices = @transform_0, window_bounds = array<i64: 2, 8, 16>}, {pipeline_mode = #tpu.pipeline_mode<synchronous>, transform_indices = @transform_1, window_bounds = array<i64: 16, 128>}, {pipeline_mode = #tpu.pipeline_mode<synchronous>, transform_indices = @transform_2, window_bounds = array<i64: 128, 128>}, {pipeline_mode = #tpu.pipeline_mode<synchronous>, transform_indices = @transform_3, window_bounds = array<i64: 128, 128>}, {pipeline_mode = #tpu.pipeline_mode<synchronous>, transform_indices = @transform_4, window_bounds = array<i64: 3, 128>}, {pipeline_mode = #tpu.pipeline_mode<synchronous>, transform_indices = @transform_5, window_bounds = array<i64: 1, 128>}, {transform_indices = @transform_6, window_bounds = array<i64: 2, 128>}]} {
    %c0 = arith.constant 0 : index
    %c0_0 = arith.constant 0 : index
    %c0_1 = arith.constant 0 : index
    %0 = vector.load %arg1[%c0, %c0_0, %c0_1] : memref<2x8x16xf32, #tpu.memory_space<vmem>>, vector<2x8x16xf32>
    %1 = vector.shape_cast %0 : vector<2x8x16xf32> to vector<16x16xf32>
    %c0_2 = arith.constant 0 : index
    %c0_3 = arith.constant 0 : index
    %2 = vector.load %arg2[%c0_2, %c0_3] : memref<16x128xf32, #tpu.memory_space<vmem>>, vector<16x128xf32>
    %cst = arith.constant dense<0.000000e+00> : vector<16x128xf32>
    %3 = tpu.matmul %1, %2, %cst {dimension_numbers = #tpu.dot_dimension_numbers<[1], [0], [0], [1], [0, 0, 1, 1], [], []>} : vector<16x16xf32>, vector<16x128xf32>, vector<16x128xf32> -> vector<16x128xf32>
    %c0_4 = arith.constant 0 : index
    %c0_5 = arith.constant 0 : index
    %4 = vector.load %arg5[%c0_4, %c0_5] : memref<3x128xf32, #tpu.memory_space<vmem>>, vector<1x128xf32>
    %5 = vector.broadcast %4 : vector<1x128xf32> to vector<16x128xf32>
    %6 = arith.addf %3, %5 : vector<16x128xf32>
    %cst_6 = arith.constant 0.000000e+00 : f32
    %7 = vector.broadcast %cst_6 : f32 to vector<16x128xf32>
    %8 = arith.maximumf %6, %7 : vector<16x128xf32>
    %c0_7 = arith.constant 0 : index
    %c0_8 = arith.constant 0 : index
    %9 = vector.load %arg3[%c0_7, %c0_8] : memref<128x128xf32, #tpu.memory_space<vmem>>, vector<128x128xf32>
    %cst_9 = arith.constant dense<0.000000e+00> : vector<16x128xf32>
    %10 = tpu.matmul %8, %9, %cst_9 {dimension_numbers = #tpu.dot_dimension_numbers<[1], [0], [0], [1], [0, 0, 1, 1], [], []>} : vector<16x128xf32>, vector<128x128xf32>, vector<16x128xf32> -> vector<16x128xf32>
    %c1 = arith.constant 1 : index
    %c0_10 = arith.constant 0 : index
    %11 = vector.load %arg5[%c1, %c0_10] : memref<3x128xf32, #tpu.memory_space<vmem>>, vector<1x128xf32>
    %12 = vector.broadcast %11 : vector<1x128xf32> to vector<16x128xf32>
    %13 = arith.addf %10, %12 : vector<16x128xf32>
    %cst_11 = arith.constant 0.000000e+00 : f32
    %14 = vector.broadcast %cst_11 : f32 to vector<16x128xf32>
    %15 = arith.maximumf %13, %14 : vector<16x128xf32>
    %c0_12 = arith.constant 0 : index
    %c0_13 = arith.constant 0 : index
    %16 = vector.load %arg4[%c0_12, %c0_13] : memref<128x128xf32, #tpu.memory_space<vmem>>, vector<128x128xf32>
    %cst_14 = arith.constant dense<0.000000e+00> : vector<16x128xf32>
    %17 = tpu.matmul %15, %16, %cst_14 {dimension_numbers = #tpu.dot_dimension_numbers<[1], [0], [0], [1], [0, 0, 1, 1], [], []>} : vector<16x128xf32>, vector<128x128xf32>, vector<16x128xf32> -> vector<16x128xf32>
    %c2 = arith.constant 2 : index
    %c0_15 = arith.constant 0 : index
    %18 = vector.load %arg5[%c2, %c0_15] : memref<3x128xf32, #tpu.memory_space<vmem>>, vector<1x128xf32>
    %19 = vector.broadcast %18 : vector<1x128xf32> to vector<16x128xf32>
    %20 = arith.addf %17, %19 : vector<16x128xf32>
    %cst_16 = arith.constant 0.000000e+00 : f32
    %21 = vector.broadcast %cst_16 : f32 to vector<16x128xf32>
    %22 = arith.maximumf %20, %21 : vector<16x128xf32>
    %23 = vector.shape_cast %22 : vector<16x128xf32> to vector<2x8x128xf32>
    %c0_17 = arith.constant 0 : index
    %c0_18 = arith.constant 0 : index
    %24 = vector.load %arg6[%c0_17, %c0_18] : memref<1x128xf32, #tpu.memory_space<vmem>>, vector<1x128xf32>
    %25 = vector.shape_cast %24 : vector<1x128xf32> to vector<1x1x128xf32>
    %26 = vector.broadcast %25 : vector<1x1x128xf32> to vector<2x8x128xf32>
    %27 = arith.mulf %23, %26 : vector<2x8x128xf32>
    %cst_19 = arith.constant dense<0.000000e+00> : vector<2x8xf32>
    %28 = vector.multi_reduction <add>, %27, %cst_19 [2] : vector<2x8x128xf32> to vector<2x8xf32>
    %29 = vector.shape_cast %28 : vector<2x8xf32> to vector<2x8x1xf32>
    %cst_20 = arith.constant dense<0xFF800000> : vector<2x1xf32>
    %30 = vector.multi_reduction <maximumf>, %29, %cst_20 [1] : vector<2x8x1xf32> to vector<2x1xf32>
    %31 = vector.shape_cast %30 : vector<2x1xf32> to vector<2x1x1xf32>
    %32 = vector.broadcast %31 : vector<2x1x1xf32> to vector<2x8x1xf32>
    %33 = arith.subf %29, %32 : vector<2x8x1xf32>
    %34 = math.exp %33 : vector<2x8x1xf32>
    %cst_21 = arith.constant dense<0.000000e+00> : vector<2x1xf32>
    %35 = vector.multi_reduction <add>, %34, %cst_21 [1] : vector<2x8x1xf32> to vector<2x1xf32>
    %36 = vector.shape_cast %35 : vector<2x1xf32> to vector<2x1x1xf32>
    %37 = vector.broadcast %36 : vector<2x1x1xf32> to vector<2x8x1xf32>
    %38 = arith.divf %34, %37 : vector<2x8x1xf32>
    %39 = vector.broadcast %38 : vector<2x8x1xf32> to vector<2x8x128xf32>
    %40 = arith.mulf %39, %23 : vector<2x8x128xf32>
    %cst_22 = arith.constant dense<0.000000e+00> : vector<2x128xf32>
    %41 = vector.multi_reduction <add>, %40, %cst_22 [1] : vector<2x8x128xf32> to vector<2x128xf32>
    %c0_23 = arith.constant 0 : index
    %c0_24 = arith.constant 0 : index
    %42 = vector.load %arg7[%c0_23, %c0_24] : memref<2x128xf32, #tpu.memory_space<vmem>>, vector<2x128xf32>
    tpu.vector_store %arg7[%c0_23, %c0_24], %41 {strides = array<i32>} : memref<2x128xf32, #tpu.memory_space<vmem>>, vector<2x128xf32>,
    return
  }
  func.func @transform_0(%arg0: i32) -> (i32, i32, i32) {
    %c0_i32 = arith.constant 0 : i32
    %c0_i32_0 = arith.constant 0 : i32
    %c0_i32_1 = arith.constant 0 : i32
    return %arg0, %c0_i32, %c0_i32_0 : i32, i32, i32
  }
  func.func @transform_1(%arg0: i32) -> (i32, i32) {
    %c0_i32 = arith.constant 0 : i32
    %c0_i32_0 = arith.constant 0 : i32
    %c0_i32_1 = arith.constant 0 : i32
    return %c0_i32, %c0_i32_0 : i32, i32
  }
  func.func @transform_2(%arg0: i32) -> (i32, i32) {
    %c0_i32 = arith.constant 0 : i32
    %c0_i32_0 = arith.constant 0 : i32
    %c0_i32_1 = arith.constant 0 : i32
    return %c0_i32, %c0_i32_0 : i32, i32
  }
  func.func @transform_3(%arg0: i32) -> (i32, i32) {
    %c0_i32 = arith.constant 0 : i32
    %c0_i32_0 = arith.constant 0 : i32
    %c0_i32_1 = arith.constant 0 : i32
    return %c0_i32, %c0_i32_0 : i32, i32
  }
  func.func @transform_4(%arg0: i32) -> (i32, i32) {
    %c0_i32 = arith.constant 0 : i32
    %c0_i32_0 = arith.constant 0 : i32
    %c0_i32_1 = arith.constant 0 : i32
    return %c0_i32, %c0_i32_0 : i32, i32
  }
  func.func @transform_5(%arg0: i32) -> (i32, i32) {
    %c0_i32 = arith.constant 0 : i32
    %c0_i32_0 = arith.constant 0 : i32
    %c0_i32_1 = arith.constant 0 : i32
    return %c0_i32, %c0_i32_0 : i32, i32
  }
  func.func @transform_6(%arg0: i32) -> (i32, i32) {
    %c0_i32 = arith.constant 0 : i32
    %c0_i32_0 = arith.constant 0 : i32
    return %arg0, %c0_i32 : i32, i32
  }
}

</mosaic_0001>

<bundles_post_ra>
// kernel: tpu_custom_call.1
= control target key start
LH: loop header
LB: loop body
LE: loop exit
PB: predicated region body
PF: predicated region fallthrough
CT: control target
= control target key end

     0   :  { %11 = vsyncpa [#allocation3], 0  ;;  %s918_s0 = inlined_call_operand.hbm [shape: f32[2,8,16], index: 0, kind: input, shape index: {}]   ;;  %s919_s1 = inlined_call_operand.hbm [shape: f32[16,128], index: 1, kind: input, shape index: {}]   ;;  %s920_s2 = inlined_call_operand.hbm [shape: f32[128,128], index: 2, kind: input, shape index: {}]   ;;  %s921_s3 = inlined_call_operand.hbm [shape: f32[128,128], index: 3, kind: input, shape index: {}]   ;;  %s922_s4 = inlined_call_operand.vmem [shape: f32[3,128], index: 4, kind: input, shape index: {}]   ;;  %s923_s5 = inlined_call_operand.vmem [shape: f32[1,128], index: 5, kind: input, shape index: {}]   ;;  %s924_s6 = inlined_call_operand.hbm [shape: f32[2,128], index: 6, kind: output, shape index: {}]  }
   0x1   :  { %12 = vsyncpa [#allocation6], 0 }
   0x2   :  { %13 = vsyncpa [#allocation9], 0 }
   0x3   :  { %14 = vsyncpa [#allocation4], 0  ;;  %s776_s21 = smov [#allocation5]   ;;  %s777_s23 = smov [#allocation2]  }
   0x4   :  { %s32_s22 = sshll.u32 %s776_s21, 4  ;;  %s20_s24 = sshll.u32 %s777_s23, 4  ;;  %s33_s22 = int_to_ptr.vmem [resolvable:$true] %s32_s22  ;;  %s818_s24 = int_to_ptr.vmem [resolvable:$true] %s20_s24 }
   0x5   :  { %s658_s27 = scalar_lea.hbm %s919_s1, 256 }
   0x6   :  { %p659_p0 = scmp.ne.s32.totalorder %s919_s1, %s658_s27  ;;  %p662_p1 = scmp.lt.u32.totalorder %s658_s27, %s919_s1 }
   0x8   :  { %p664_p2 = pnand %p662_p1, %p659_p0 }
   0xa   :  { %667 = shalt.err (!%p664_p2)
}
   0xb   :  { %s668_s8 = scalar_lea.vmem %s33_s22, 256  ;;  %p673_p4 = scmp.lt.s32.totalorder %s33_s22, %s33_s22 }
   0xc   :  { %p669_p3 = scmp.ne.s32.totalorder %s33_s22, %s668_s8  ;;  %p674_p5 = scmp.lt.s32.totalorder %s668_s8, %s668_s8 }
   0xe   :  { %p675_p6 = por %p674_p5, %p673_p4 }
  0x10   :  { %p676_p7 = pnand %p675_p6, %p669_p3 }
  0x12   :  { %679 = shalt.err (!%p676_p7)
}
  0x13   :  { %s778_s9 = smov 128   ;;  %s779_s10 = smov 8  }
  0x14   :  { %38 = dma.hbm_to_vmem [thread:$0]  %s919_s1, 256, %s33_s22, [#allocation6], %s778_s9, %s778_s9, %s779_s10  }
  0x15   :  { %s680_s15 = scalar_lea.hbm %s918_s0, 256 }
  0x16   :  { %p681_p8 = scmp.ne.s32.totalorder %s918_s0, %s680_s15  ;;  %p684_p9 = scmp.lt.u32.totalorder %s680_s15, %s918_s0 }
  0x18   :  { %p686_p10 = pnand %p684_p9, %p681_p8 }
  0x1a   :  { %689 = shalt.err (!%p686_p10)
}
  0x1b   :  { %s690_s20 = scalar_lea.vmem %s818_s24, 256  ;;  %p695_p12 = scmp.lt.s32.totalorder %s818_s24, %s818_s24 }
  0x1c   :  { %p691_p11 = scmp.ne.s32.totalorder %s818_s24, %s690_s20  ;;  %p696_p13 = scmp.lt.s32.totalorder %s690_s20, %s690_s20 }
  0x1e   :  { %p697_p0 = por %p696_p13, %p695_p12 }
  0x20   :  { %p698_p1 = pnand %p697_p0, %p691_p11 }
  0x22   :  { %701 = shalt.err (!%p698_p1)
}
  0x23   :  { %26 = dma.hbm_to_vmem [thread:$0]  %s918_s0, 256, %s818_s24, [#allocation3], %s778_s9, %s778_s9, %s779_s10  }
  0x24   :  { %s780_s22 = smov [#allocation7]   ;;  %s781_s25 = smov [#allocation8]  }
  0x25   :  { %s44_s23 = sshll.u32 %s780_s22, 4  ;;  %s56_s26 = sshll.u32 %s781_s25, 4  ;;  %s45_s23 = int_to_ptr.vmem [resolvable:$true] %s44_s23  ;;  %s855_s26 = int_to_ptr.vmem [resolvable:$true] %s56_s26 }
  0x26   :  { %s702_s29 = scalar_lea.hbm %s920_s2, 2048 }
  0x27   :  { %p703_p2 = scmp.ne.s32.totalorder %s920_s2, %s702_s29  ;;  %p706_p3 = scmp.lt.u32.totalorder %s702_s29, %s920_s2 }
  0x29   :  { %p708_p4 = pnand %p706_p3, %p703_p2 }
  0x2b   :  { %711 = shalt.err (!%p708_p4)
}
  0x2c   :  { %s712_s0 = scalar_lea.vmem %s45_s23, 2048  ;;  %p717_p6 = scmp.lt.s32.totalorder %s45_s23, %s45_s23 }
  0x2d   :  { %p713_p5 = scmp.ne.s32.totalorder %s45_s23, %s712_s0  ;;  %p718_p7 = scmp.lt.s32.totalorder %s712_s0, %s712_s0 }
  0x2f   :  { %p719_p8 = por %p718_p7, %p717_p6 }
  0x31   :  { %p720_p9 = pnand %p719_p8, %p713_p5 }
  0x33   :  { %723 = shalt.err (!%p720_p9)
}
  0x34   :  { %50 = dma.hbm_to_vmem [thread:$0]  %s920_s2, 2048, %s45_s23, [#allocation6], %s778_s9, %s778_s9, %s779_s10  }
  0x35   :  { %s724_s15 = scalar_lea.hbm %s921_s3, 2048 }
  0x36   :  { %p725_p10 = scmp.ne.s32.totalorder %s921_s3, %s724_s15  ;;  %p728_p11 = scmp.lt.u32.totalorder %s724_s15, %s921_s3 }
  0x38   :  { %p730_p12 = pnand %p728_p11, %p725_p10 }
  0x3a   :  { %733 = shalt.err (!%p730_p12)
}
  0x3b   :  { %s734_s20 = scalar_lea.vmem %s855_s26, 2048  ;;  %p739_p0 = scmp.lt.s32.totalorder %s855_s26, %s855_s26 }
  0x3c   :  { %p735_p13 = scmp.ne.s32.totalorder %s855_s26, %s734_s20  ;;  %p740_p1 = scmp.lt.s32.totalorder %s734_s20, %s734_s20 }
  0x3e   :  { %p741_p2 = por %p740_p1, %p739_p0 }
  0x40   :  { %p742_p3 = pnand %p741_p2, %p735_p13 }
  0x42   :  { %745 = shalt.err (!%p742_p3)
}
  0x43   :  { %62 = dma.hbm_to_vmem [thread:$0]  %s921_s3, 2048, %s855_s26, [#allocation9], %s778_s9, %s778_s9, %s779_s10  }
  0x44   :  { %768 = dma.done.wait [#allocation3], 256  }
  0x45   :  { %769 = vsyncadd [#allocation3], 4294967040 }
  0x46   :  { %770 = dma.done.wait [#allocation6], 2304  }
  0x47   :  { %771 = vsyncadd [#allocation6], 4294964992 }
  0x48   :  { %772 = dma.done.wait [#allocation9], 2048  }
  0x49   :  { %773 = vsyncadd [#allocation9], 4294965248  ;;  %vm88_vm0 = vcmask 130048   ;;  %v81_v0 = vld [vmem:[#allocation5] sm:$0xff]  ;;  %v82_v1 = vld [vmem:[#allocation5 + $0x8] sm:$0xff]  ;;  %vm431_vm1 = vcmask 1041409  }
  0x4a   :  { %v79_v2 = vld [vmem:[#allocation2] sm:$0xff]  ;;  %v575_v3 = vpack.c.bf16 %v82_v1, %v81_v0  ;;  %v173_v5 = vld [vmem:[#allocation7 + $0x8] sm:$0xff]  ;;  %v174_v7 = vld [vmem:[#allocation7 + $0x10] sm:$0xff] }
  0x4b   :  { %502 = vmatprep.mubr.msk.f32.mxu0 %vm88_vm0, %v79_v2  ;;  %v172_v4 = vld [vmem:[#allocation7] sm:$0xff]  ;;  %v175_v8 = vld [vmem:[#allocation7 + $0x18] sm:$0xff]  ;;  %v177_v11 = vld [vmem:[#allocation7 + $0x28] sm:$0xff] }
  0x4c   :  { %v579_v6 = vpack.c.bf16 %v173_v5, %v172_v4  ;;  %576 = vmatprep.subr.bf16.mxu0 %v575_v3  ;;  %v583_v9 = vpack.c.bf16 %v175_v8, %v174_v7  ;;  %v176_v10 = vld [vmem:[#allocation7 + $0x20] sm:$0xff]  ;;  %v80_v12 = vld [vmem:[#allocation2 + $0x8] sm:$0xff]  ;;  %v178_v14 = vld [vmem:[#allocation7 + $0x30] sm:$0xff] }
  0x4d   :  { %578 = vmatpush3.bf16.msra.mxu0 %v575_v3  ;;  %v587_v13 = vpack.c.bf16 %v177_v11, %v176_v10  ;;  %v179_v15 = vld [vmem:[#allocation7 + $0x38] sm:$0xff]  ;;  %v180_v17 = vld [vmem:[#allocation7 + $0x40] sm:$0xff]  ;;  %v181_v18 = vld [vmem:[#allocation7 + $0x48] sm:$0xff] }
  0x4e   :  { %580 = vmatprep.subr.bf16.mxu1 %v579_v6  ;;  %v591_v16 = vpack.c.bf16 %v179_v15, %v178_v14  ;;  %v595_v19 = vpack.c.bf16 %v181_v18, %v180_v17  ;;  %v182_v20 = vld [vmem:[#allocation7 + $0x50] sm:$0xff]  ;;  %v183_v21 = vld [vmem:[#allocation7 + $0x58] sm:$0xff]  ;;  %v184_v23 = vld [vmem:[#allocation7 + $0x60] sm:$0xff] }
  0x4f   :  { %582 = vmatpush3.bf16.msra.mxu1 %v579_v6  ;;  %v599_v22 = vpack.c.bf16 %v183_v21, %v182_v20  ;;  %v185_v24 = vld [vmem:[#allocation7 + $0x68] sm:$0xff]  ;;  %v186_v26 = vld [vmem:[#allocation7 + $0x70] sm:$0xff]  ;;  %v187_v27 = vld [vmem:[#allocation7 + $0x78] sm:$0xff] }
  0x50   :  { %584 = vmatprep.subr.bf16.mxu1 %v583_v9  ;;  %503 = vmatmul.mubr.msk.f32.vlgmr.msra.gmra.mrb[0].mxu0 %vm88_vm0, %v80_v12  ;;  %v603_v25 = vpack.c.bf16 %v185_v24, %v184_v23  ;;  %v607_v28 = vpack.c.bf16 %v187_v27, %v186_v26  ;;  %v270_v29 = vld [vmem:[#allocation8] sm:$0xff]  ;;  %v271_v30 = vld [vmem:[#allocation8 + $0x8] sm:$0xff]  ;;  %v272_v31 = vld [vmem:[#allocation8 + $0x10] sm:$0xff] }
  0x51   :  { %v611_v32 = vpack.c.bf16 %v271_v30, %v270_v29  ;;  %v273_v33 = vld [vmem:[#allocation8 + $0x18] sm:$0xff]  ;;  %v274_v35 = vld [vmem:[#allocation8 + $0x20] sm:$0xff]  ;;  %v275_v36 = vld [vmem:[#allocation8 + $0x28] sm:$0xff] }
  0x52   :  { %v615_v34 = vpack.c.bf16 %v273_v33, %v272_v31  ;;  %v619_v37 = vpack.c.bf16 %v275_v36, %v274_v35  ;;  %v276_v38 = vld [vmem:[#allocation8 + $0x30] sm:$0xff]  ;;  %v277_v39 = vld [vmem:[#allocation8 + $0x38] sm:$0xff]  ;;  %v278_v41 = vld [vmem:[#allocation8 + $0x40] sm:$0xff] }
  0x53   :  { %586 = vmatpush3.bf16.msra.mxu1 %v583_v9  ;;  %612 = vmatprep.subr.bf16.mxu0 %v611_v32  ;;  %v623_v40 = vpack.c.bf16 %v277_v39, %v276_v38  ;;  %v279_v42 = vld [vmem:[#allocation8 + $0x48] sm:$0xff]  ;;  %v280_v44 = vld [vmem:[#allocation8 + $0x50] sm:$0xff]  ;;  %v281_v45 = vld [vmem:[#allocation8 + $0x58] sm:$0xff] }
  0x54   :  { %588 = vmatprep.subr.bf16.mxu1 %v587_v13  ;;  %614 = vmatpush3.bf16.msra.mxu0 %v611_v32  ;;  %v627_v43 = vpack.c.bf16 %v279_v42, %v278_v41  ;;  %v631_v46 = vpack.c.bf16 %v281_v45, %v280_v44  ;;  %v282_v47 = vld [vmem:[#allocation8 + $0x60] sm:$0xff]  ;;  %v283_v48 = vld [vmem:[#allocation8 + $0x68] sm:$0xff]  ;;  %v284_v57 = vld [vmem:[#allocation8 + $0x70] sm:$0xff] }
  0x55   :  { %616 = vmatprep.subr.bf16.mxu0 %v615_v34  ;;  %v635_v49 = vpack.c.bf16 %v283_v48, %v282_v47  ;;  %v452_v50 = vld [vmem:[%s922_s4] ss:$0 sm:$0xff]  ;;  %v285_v58 = vld [vmem:[#allocation8 + $0x78] sm:$0xff]  ;;  %v455_v60 = vld [vmem:[%s922_s4 + $0x1] ss:$0 sm:$0xff] }
  0x56   :  { %v639_v59 = vpack.c.bf16 %v285_v58, %v284_v57  ;;  %v456_v3 = vld [vmem:[%s922_s4 + $0x2] ss:$0 sm:$0xff]  ;;  %v457_v8 = vld [vmem:[%s923_s5] ss:$0 sm:$0xff]  ;;  %s782_s4 = smov [#allocation10]  }
  0x57   :  { %590 = vmatpush3.bf16.msra.mxu1 %v587_v13  ;;  %s441_s5 = sshll.u32 %s782_s4, 4  ;;  %s442_s5 = int_to_ptr.vmem [resolvable:$true] %s441_s5 }
  0x58   :  { %592 = vmatprep.subr.bf16.mxu1 %v591_v16  ;;  %618 = vmatpush3.bf16.msra.mxu0 %v615_v34  ;;  %s746_s27 = scalar_lea.vmem %s442_s5, 32  ;;  %p751_p5 = scmp.lt.s32.totalorder %s442_s5, %s442_s5 }
  0x59   :  { %620 = vmatprep.subr.bf16.mxu0 %v619_v37  ;;  %p747_p4 = scmp.ne.s32.totalorder %s442_s5, %s746_s27  ;;  %p752_p6 = scmp.lt.s32.totalorder %s746_s27, %s746_s27 }
  0x5b   :  { %594 = vmatpush3.bf16.msra.mxu1 %v591_v16  ;;  %p753_p7 = por %p752_p6, %p751_p5 }
  0x5c   :  { %596 = vmatprep.subr.bf16.mxu1 %v595_v19  ;;  %622 = vmatpush3.bf16.msra.mxu0 %v619_v37 }
  0x5d   :  { %624 = vmatprep.subr.bf16.mxu0 %v623_v40  ;;  %p754_p8 = pnand %p753_p7, %p747_p4 }
  0x5f   :  { %598 = vmatpush3.bf16.msra.mxu1 %v595_v19 }
  0x60   :  { %600 = vmatprep.subr.bf16.mxu1 %v599_v22  ;;  %626 = vmatpush3.bf16.msra.mxu0 %v623_v40 }
  0x61   :  { %628 = vmatprep.subr.bf16.mxu0 %v627_v43 }
  0x63   :  { %602 = vmatpush3.bf16.msra.mxu1 %v599_v22 }
  0x64   :  { %604 = vmatprep.subr.bf16.mxu1 %v603_v25  ;;  %630 = vmatpush3.bf16.msra.mxu0 %v627_v43 }
  0x65   :  { %632 = vmatprep.subr.bf16.mxu0 %v631_v46 }
  0x67   :  { %606 = vmatpush3.bf16.msra.mxu1 %v603_v25 }
  0x68   :  { %608 = vmatprep.subr.bf16.mxu1 %v607_v28  ;;  %634 = vmatpush3.bf16.msra.mxu0 %v631_v46 }
  0x69   :  { %636 = vmatprep.subr.bf16.mxu0 %v635_v49 }
  0x6b   :  { %610 = vmatpush3.bf16.msra.mxu1 %v607_v28 }
  0x6c   :  { %638 = vmatpush3.bf16.msra.mxu0 %v635_v49 }
  0x6d   :  { %640 = vmatprep.subr.bf16.mxu0 %v639_v59 }
  0x70   :  { %642 = vmatpush3.bf16.msra.mxu0 %v639_v59 }
 0x123   :  { %v504_v51 = vpop.f32.mrb[0].mxu0 }
 0x124   :  { %v167_v52 = vadd.f32 %v504_v51, %v452_v50  ;;  %v161_v53 = vpop.f32.mrb[1].mxu0 }
 0x125   :  { %v162_v54 = vadd.f32 %v452_v50, %v161_v53 }
 0x126   :  { %v171_v56 = vmax.f32 %v167_v52, 0.0 }
 0x127   :  { %v170_v55 = vmax.f32 %v162_v54, 0.0 }
 0x129   :  { %537 = vmatprep.mubr.f32.mxu1 %v170_v55 }
 0x12a   :  { %538 = vmatmul.mubr.f32.vlgmr.msra.gmra.mrb[0].mxu1 %v171_v56 }
 0x1fd   :  { %v539_v61 = vpop.f32.mrb[0].mxu1 }
 0x1fe   :  { %v265_v62 = vadd.f32 %v539_v61, %v455_v60  ;;  %v259_v63 = vpop.f32.mrb[1].mxu1 }
 0x1ff   :  { %v260_v0 = vadd.f32 %v455_v60, %v259_v63 }
 0x200   :  { %v269_v2 = vmax.f32 %v265_v62, 0.0 }
 0x201   :  { %v268_v1 = vmax.f32 %v260_v0, 0.0 }
 0x203   :  { %572 = vmatprep.mubr.f32.mxu0 %v268_v1 }
 0x204   :  { %573 = vmatmul.mubr.f32.vlgmr.msra.gmra.mrb[2].mxu0 %v269_v2 }
 0x2d7   :  { %v574_v4 = vpop.f32.mrb[2].mxu0 }
 0x2d8   :  { %v357_v5 = vpop.f32.mrb[3].mxu0  ;;  %v363_v6 = vadd.f32 %v574_v4, %v456_v3 }
 0x2d9   :  { %v358_v7 = vadd.f32 %v456_v3, %v357_v5 }
 0x2da   :  { %v367_v10 = vmax.f32 %v363_v6, 0.0 }
 0x2db   :  { %v366_v9 = vmax.f32 %v358_v7, 0.0 }
 0x2dc   :  { %v376_v12 = vmul.f32 %v457_v8, %v367_v10 }
 0x2dd   :  { %v375_v11 = vmul.f32 %v457_v8, %v366_v9 }
 0x2df   :  { %377 = vadd.xlane.f32.xlu0 %v375_v11 }
 0x2e3   :  { %379 = vadd.xlane.f32.xlu0 %v376_v12 }
 0x36c   :  { %v378_v13 = vpop.xlane.xlu0 %377 }
 0x36d   :  { %v381_v14 = vrot.slane %v378_v13, 4 }
 0x36f   :  { %v382_v15 = vmax.f32 %v378_v13, %v381_v14 }
 0x370   :  { %v380_v16 = vpop.xlane.xlu0 %379 }
 0x371   :  { %v383_v17 = vrot.slane %v382_v15, 2  ;;  %v387_v18 = vrot.slane %v380_v16, 4 }
 0x373   :  { %v384_v19 = vmax.f32 %v382_v15, %v383_v17  ;;  %v388_v20 = vmax.f32 %v380_v16, %v387_v18 }
 0x375   :  { %v385_v21 = vrot.slane %v384_v19, 1  ;;  %v389_v22 = vrot.slane %v388_v20, 2 }
 0x377   :  { %v386_v23 = vmax.f32 %v384_v19, %v385_v21  ;;  %v390_v24 = vmax.f32 %v388_v20, %v389_v22 }
 0x379   :  { %v393_v25 = vsub.f32 %v378_v13, %v386_v23  ;;  %v391_v26 = vrot.slane %v390_v24, 1 }
 0x37b   :  { %v395_v27 = vmul.f32 1.442695, %v393_v25  ;;  %v392_v28 = vmax.f32 %v390_v24, %v391_v26 }
 0x37d   :  { %650 = vpow2.f32 %v395_v27  ;;  %v394_v29 = vsub.f32 %v380_v16, %v392_v28 }
 0x37f   :  { %v397_v30 = vmul.f32 1.442695, %v394_v29 }
 0x381   :  { %652 = vpow2.f32 %v397_v30 }
 0x387   :  { %v651_v31 = vpop.eup %650 }
 0x388   :  { %v399_v32 = vrot.slane %v651_v31, 4 }
 0x38a   :  { %v400_v33 = vadd.f32 %v651_v31, %v399_v32 }
 0x38b   :  { %v653_v34 = vpop.eup %652 }
 0x38c   :  { %v405_v35 = vrot.slane %v653_v34, 4  ;;  %v401_v36 = vrot.slane %v400_v33, 2 }
 0x38e   :  { %v406_v37 = vadd.f32 %v653_v34, %v405_v35  ;;  %v402_v38 = vadd.f32 %v401_v36, %v400_v33 }
 0x390   :  { %v407_v39 = vrot.slane %v406_v37, 2  ;;  %v403_v40 = vrot.slane %v402_v38, 1 }
 0x392   :  { %v404_v41 = vadd.f32 %v403_v40, %v402_v38  ;;  %v408_v42 = vadd.f32 %v407_v39, %v406_v37 }
 0x394   :  { %v409_v43 = vrot.slane %v408_v42, 1  ;;  %654 = vrcp.f32 %v404_v41 }
 0x396   :  { %v410_v44 = vadd.f32 %v409_v43, %v408_v42 }
 0x398   :  { %656 = vrcp.f32 %v410_v44 }
 0x39e   :  { %v655_v45 = vpop.eup %654 }
 0x39f   :  { %v412_v46 = vmul.f32 %v655_v45, %v651_v31 }
 0x3a1   :  { %v415_v47 = vmul.f32 %v412_v46, %v366_v9 }
 0x3a2   :  { %v657_v48 = vpop.eup %656 }
 0x3a3   :  { %v414_v49 = vmul.f32 %v657_v48, %v653_v34  ;;  %v417_v50 = vrot.slane %v415_v47, 4 }
 0x3a5   :  { %v416_v51 = vmul.f32 %v414_v49, %v367_v10  ;;  %v418_v52 = vadd.f32 %v417_v50, %v415_v47 }
 0x3a7   :  { %v419_v53 = vrot.slane %v418_v52, 2  ;;  %v423_v54 = vrot.slane %v416_v51, 4 }
 0x3a9   :  { %v420_v55 = vadd.f32 %v419_v53, %v418_v52  ;;  %v424_v56 = vadd.f32 %v423_v54, %v416_v51 }
 0x3ab   :  { %v425_v57 = vrot.slane %v424_v56, 2  ;;  %v421_v58 = vrot.slane %v420_v55, 1 }
 0x3ad   :  { %v426_v59 = vadd.f32 %v425_v57, %v424_v56  ;;  %v422_v61 = vadd.f32 %v421_v58, %v420_v55 }
 0x3af   :  { %v427_v60 = vrot.slane %v426_v59, 1 }
 0x3b1   :  { %v428_v62 = vadd.f32 %v427_v60, %v426_v59 }
 0x3b3   :  { %v432_v63 = vsel %vm431_vm1, %v428_v62, %v422_v61 }
 0x3b4   :  { %434 = vst [vmem:[#allocation10] sm:$0x3] %v432_v63 }
 0x3b5   :  { %757 = shalt.err (!%p754_p8)
}
 0x3b6   :  { %s758_s30 = scalar_lea.hbm %s924_s6, 32 }
 0x3b7   :  { %p759_p9 = scmp.ne.s32.totalorder %s924_s6, %s758_s30  ;;  %p762_p10 = scmp.lt.u32.totalorder %s758_s30, %s924_s6 }
 0x3b9   :  { %p764_p11 = pnand %p762_p10, %p759_p9 }
 0x3bb   :  { %767 = shalt.err (!%p764_p11)
}
 0x3bc   :  { %444 = dma.vmem_to_hbm [thread:$0]  %s442_s5, 32, %s924_s6, [#allocation4]  }
 0x3bd   :  { %774 = dma.done.wait [#allocation4], 32  }
 0x3be   :  { %775 = vsyncadd [#allocation4], 4294967264 }
 0x3bf   :  { %448 = vsyncpa [#allocation3], 1 }
 0x3c0   :  { %449 = vsyncpa [#allocation6], 1 }
 0x3c1   :  { %450 = vsyncpa [#allocation9], 1 }
 0x3c2   :  { %451 = vsyncpa [#allocation4], 1 }

// kernel: tpu_custom_call.1
= control target key start
LH: loop header
LB: loop body
LE: loop exit
PB: predicated region body
PF: predicated region fallthrough
CT: control target
= control target key end

     0   :  { %11 = vsyncpa [#allocation3], 0  ;;  %s918_s0 = inlined_call_operand.hbm [shape: f32[2,8,16], index: 0, kind: input, shape index: {}]   ;;  %s919_s1 = inlined_call_operand.hbm [shape: f32[16,128], index: 1, kind: input, shape index: {}]   ;;  %s920_s2 = inlined_call_operand.hbm [shape: f32[128,128], index: 2, kind: input, shape index: {}]   ;;  %s921_s3 = inlined_call_operand.hbm [shape: f32[128,128], index: 3, kind: input, shape index: {}]   ;;  %s922_s4 = inlined_call_operand.vmem [shape: f32[3,128], index: 4, kind: input, shape index: {}]   ;;  %s923_s5 = inlined_call_operand.vmem [shape: f32[1,128], index: 5, kind: input, shape index: {}]   ;;  %s924_s6 = inlined_call_operand.hbm [shape: f32[2,128], index: 6, kind: output, shape index: {}]  }
   0x1   :  { %12 = vsyncpa [#allocation6], 0 }
   0x2   :  { %13 = vsyncpa [#allocation9], 0 }
   0x3   :  { %14 = vsyncpa [#allocation4], 0  ;;  %s776_s21 = smov [#allocation5]   ;;  %s777_s23 = smov [#allocation2]  }
   0x4   :  { %s32_s22 = sshll.u32 %s776_s21, 4  ;;  %s20_s24 = sshll.u32 %s777_s23, 4  ;;  %s33_s22 = int_to_ptr.vmem [resolvable:$true] %s32_s22  ;;  %s818_s24 = int_to_ptr.vmem [resolvable:$true] %s20_s24 }
   0x5   :  { %s658_s27 = scalar_lea.hbm %s919_s1, 256 }
   0x6   :  { %p659_p0 = scmp.ne.s32.totalorder %s919_s1, %s658_s27  ;;  %p662_p1 = scmp.lt.u32.totalorder %s658_s27, %s919_s1 }
   0x8   :  { %p664_p2 = pnand %p662_p1, %p659_p0 }
   0xa   :  { %667 = shalt.err (!%p664_p2)
}
   0xb   :  { %s668_s8 = scalar_lea.vmem %s33_s22, 256  ;;  %p673_p4 = scmp.lt.s32.totalorder %s33_s22, %s33_s22 }
   0xc   :  { %p669_p3 = scmp.ne.s32.totalorder %s33_s22, %s668_s8  ;;  %p674_p5 = scmp.lt.s32.totalorder %s668_s8, %s668_s8 }
   0xe   :  { %p675_p6 = por %p674_p5, %p673_p4 }
  0x10   :  { %p676_p7 = pnand %p675_p6, %p669_p3 }
  0x12   :  { %679 = shalt.err (!%p676_p7)
}
  0x13   :  { %s778_s9 = smov 128   ;;  %s779_s10 = smov 8  }
  0x14   :  { %38 = dma.hbm_to_vmem [thread:$0]  %s919_s1, 256, %s33_s22, [#allocation6], %s778_s9, %s778_s9, %s779_s10  }
  0x15   :  { %s680_s15 = scalar_lea.hbm %s918_s0, 256 }
  0x16   :  { %p681_p8 = scmp.ne.s32.totalorder %s918_s0, %s680_s15  ;;  %p684_p9 = scmp.lt.u32.totalorder %s680_s15, %s918_s0 }
  0x18   :  { %p686_p10 = pnand %p684_p9, %p681_p8 }
  0x1a   :  { %689 = shalt.err (!%p686_p10)
}
  0x1b   :  { %s690_s20 = scalar_lea.vmem %s818_s24, 256  ;;  %p695_p12 = scmp.lt.s32.totalorder %s818_s24, %s818_s24 }
  0x1c   :  { %p691_p11 = scmp.ne.s32.totalorder %s818_s24, %s690_s20  ;;  %p696_p13 = scmp.lt.s32.totalorder %s690_s20, %s690_s20 }
  0x1e   :  { %p697_p0 = por %p696_p13, %p695_p12 }
  0x20   :  { %p698_p1 = pnand %p697_p0, %p691_p11 }
  0x22   :  { %701 = shalt.err (!%p698_p1)
}
  0x23   :  { %26 = dma.hbm_to_vmem [thread:$0]  %s918_s0, 256, %s818_s24, [#allocation3], %s778_s9, %s778_s9, %s779_s10  }
  0x24   :  { %s780_s22 = smov [#allocation7]   ;;  %s781_s25 = smov [#allocation8]  }
  0x25   :  { %s44_s23 = sshll.u32 %s780_s22, 4  ;;  %s56_s26 = sshll.u32 %s781_s25, 4  ;;  %s45_s23 = int_to_ptr.vmem [resolvable:$true] %s44_s23  ;;  %s855_s26 = int_to_ptr.vmem [resolvable:$true] %s56_s26 }
  0x26   :  { %s702_s29 = scalar_lea.hbm %s920_s2, 2048 }
  0x27   :  { %p703_p2 = scmp.ne.s32.totalorder %s920_s2, %s702_s29  ;;  %p706_p3 = scmp.lt.u32.totalorder %s702_s29, %s920_s2 }
  0x29   :  { %p708_p4 = pnand %p706_p3, %p703_p2 }
  0x2b   :  { %711 = shalt.err (!%p708_p4)
}
  0x2c   :  { %s712_s0 = scalar_lea.vmem %s45_s23, 2048  ;;  %p717_p6 = scmp.lt.s32.totalorder %s45_s23, %s45_s23 }
  0x2d   :  { %p713_p5 = scmp.ne.s32.totalorder %s45_s23, %s712_s0  ;;  %p718_p7 = scmp.lt.s32.totalorder %s712_s0, %s712_s0 }
  0x2f   :  { %p719_p8 = por %p718_p7, %p717_p6 }
  0x31   :  { %p720_p9 = pnand %p719_p8, %p713_p5 }
  0x33   :  { %723 = shalt.err (!%p720_p9)
}
  0x34   :  { %50 = dma.hbm_to_vmem [thread:$0]  %s920_s2, 2048, %s45_s23, [#allocation6], %s778_s9, %s778_s9, %s779_s10  }
  0x35   :  { %s724_s15 = scalar_lea.hbm %s921_s3, 2048 }
  0x36   :  { %p725_p10 = scmp.ne.s32.totalorder %s921_s3, %s724_s15  ;;  %p728_p11 = scmp.lt.u32.totalorder %s724_s15, %s921_s3 }
  0x38   :  { %p730_p12 = pnand %p728_p11, %p725_p10 }
  0x3a   :  { %733 = shalt.err (!%p730_p12)
}
  0x3b   :  { %s734_s20 = scalar_lea.vmem %s855_s26, 2048  ;;  %p739_p0 = scmp.lt.s32.totalorder %s855_s26, %s855_s26 }
  0x3c   :  { %p735_p13 = scmp.ne.s32.totalorder %s855_s26, %s734_s20  ;;  %p740_p1 = scmp.lt.s32.totalorder %s734_s20, %s734_s20 }
  0x3e   :  { %p741_p2 = por %p740_p1, %p739_p0 }
  0x40   :  { %p742_p3 = pnand %p741_p2, %p735_p13 }
  0x42   :  { %745 = shalt.err (!%p742_p3)
}
  0x43   :  { %62 = dma.hbm_to_vmem [thread:$0]  %s921_s3, 2048, %s855_s26, [#allocation9], %s778_s9, %s778_s9, %s779_s10  }
  0x44   :  { %768 = dma.done.wait [#allocation3], 256  }
  0x45   :  { %769 = vsyncadd [#allocation3], 4294967040 }
  0x46   :  { %770 = dma.done.wait [#allocation6], 2304  }
  0x47   :  { %771 = vsyncadd [#allocation6], 4294964992 }
  0x48   :  { %772 = dma.done.wait [#allocation9], 2048  }
  0x49   :  { %773 = vsyncadd [#allocation9], 4294965248  ;;  %vm88_vm0 = vcmask 130048   ;;  %v81_v0 = vld [vmem:[#allocation5] sm:$0xff]  ;;  %v82_v1 = vld [vmem:[#allocation5 + $0x8] sm:$0xff]  ;;  %vm431_vm1 = vcmask 1041409  }
  0x4a   :  { %v79_v2 = vld [vmem:[#allocation2] sm:$0xff]  ;;  %v575_v3 = vpack.c.bf16 %v82_v1, %v81_v0  ;;  %v173_v5 = vld [vmem:[#allocation7 + $0x8] sm:$0xff]  ;;  %v174_v7 = vld [vmem:[#allocation7 + $0x10] sm:$0xff] }
  0x4b   :  { %502 = vmatprep.mubr.msk.f32.mxu0 %vm88_vm0, %v79_v2  ;;  %v172_v4 = vld [vmem:[#allocation7] sm:$0xff]  ;;  %v175_v8 = vld [vmem:[#allocation7 + $0x18] sm:$0xff]  ;;  %v177_v11 = vld [vmem:[#allocation7 + $0x28] sm:$0xff] }
  0x4c   :  { %v579_v6 = vpack.c.bf16 %v173_v5, %v172_v4  ;;  %576 = vmatprep.subr.bf16.mxu0 %v575_v3  ;;  %v583_v9 = vpack.c.bf16 %v175_v8, %v174_v7  ;;  %v176_v10 = vld [vmem:[#allocation7 + $0x20] sm:$0xff]  ;;  %v80_v12 = vld [vmem:[#allocation2 + $0x8] sm:$0xff]  ;;  %v178_v14 = vld [vmem:[#allocation7 + $0x30] sm:$0xff] }
  0x4d   :  { %578 = vmatpush3.bf16.msra.mxu0 %v575_v3  ;;  %v587_v13 = vpack.c.bf16 %v177_v11, %v176_v10  ;;  %v179_v15 = vld [vmem:[#allocation7 + $0x38] sm:$0xff]  ;;  %v180_v17 = vld [vmem:[#allocation7 + $0x40] sm:$0xff]  ;;  %v181_v18 = vld [vmem:[#allocation7 + $0x48] sm:$0xff] }
  0x4e   :  { %580 = vmatprep.subr.bf16.mxu1 %v579_v6  ;;  %v591_v16 = vpack.c.bf16 %v179_v15, %v178_v14  ;;  %v595_v19 = vpack.c.bf16 %v181_v18, %v180_v17  ;;  %v182_v20 = vld [vmem:[#allocation7 + $0x50] sm:$0xff]  ;;  %v183_v21 = vld [vmem:[#allocation7 + $0x58] sm:$0xff]  ;;  %v184_v23 = vld [vmem:[#allocation7 + $0x60] sm:$0xff] }
  0x4f   :  { %582 = vmatpush3.bf16.msra.mxu1 %v579_v6  ;;  %v599_v22 = vpack.c.bf16 %v183_v21, %v182_v20  ;;  %v185_v24 = vld [vmem:[#allocation7 + $0x68] sm:$0xff]  ;;  %v186_v26 = vld [vmem:[#allocation7 + $0x70] sm:$0xff]  ;;  %v187_v27 = vld [vmem:[#allocation7 + $0x78] sm:$0xff] }
  0x50   :  { %584 = vmatprep.subr.bf16.mxu1 %v583_v9  ;;  %503 = vmatmul.mubr.msk.f32.vlgmr.msra.gmra.mrb[0].mxu0 %vm88_vm0, %v80_v12  ;;  %v603_v25 = vpack.c.bf16 %v185_v24, %v184_v23  ;;  %v607_v28 = vpack.c.bf16 %v187_v27, %v186_v26  ;;  %v270_v29 = vld [vmem:[#allocation8] sm:$0xff]  ;;  %v271_v30 = vld [vmem:[#allocation8 + $0x8] sm:$0xff]  ;;  %v272_v31 = vld [vmem:[#allocation8 + $0x10] sm:$0xff] }
  0x51   :  { %v611_v32 = vpack.c.bf16 %v271_v30, %v270_v29  ;;  %v273_v33 = vld [vmem:[#allocation8 + $0x18] sm:$0xff]  ;;  %v274_v35 = vld [vmem:[#allocation8 + $0x20] sm:$0xff]  ;;  %v275_v36 = vld [vmem:[#allocation8 + $0x28] sm:$0xff] }
  0x52   :  { %v615_v34 = vpack.c.bf16 %v273_v33, %v272_v31  ;;  %v619_v37 = vpack.c.bf16 %v275_v36, %v274_v35  ;;  %v276_v38 = vld [vmem:[#allocation8 + $0x30] sm:$0xff]  ;;  %v277_v39 = vld [vmem:[#allocation8 + $0x38] sm:$0xff]  ;;  %v278_v41 = vld [vmem:[#allocation8 + $0x40] sm:$0xff] }
  0x53   :  { %586 = vmatpush3.bf16.msra.mxu1 %v583_v9  ;;  %612 = vmatprep.subr.bf16.mxu0 %v611_v32  ;;  %v623_v40 = vpack.c.bf16 %v277_v39, %v276_v38  ;;  %v279_v42 = vld [vmem:[#allocation8 + $0x48] sm:$0xff]  ;;  %v280_v44 = vld [vmem:[#allocation8 + $0x50] sm:$0xff]  ;;  %v281_v45 = vld [vmem:[#allocation8 + $0x58] sm:$0xff] }
  0x54   :  { %588 = vmatprep.subr.bf16.mxu1 %v587_v13  ;;  %614 = vmatpush3.bf16.msra.mxu0 %v611_v32  ;;  %v627_v43 = vpack.c.bf16 %v279_v42, %v278_v41  ;;  %v631_v46 = vpack.c.bf16 %v281_v45, %v280_v44  ;;  %v282_v47 = vld [vmem:[#allocation8 + $0x60] sm:$0xff]  ;;  %v283_v48 = vld [vmem:[#allocation8 + $0x68] sm:$0xff]  ;;  %v284_v57 = vld [vmem:[#allocation8 + $0x70] sm:$0xff] }
  0x55   :  { %616 = vmatprep.subr.bf16.mxu0 %v615_v34  ;;  %v635_v49 = vpack.c.bf16 %v283_v48, %v282_v47  ;;  %v452_v50 = vld [vmem:[%s922_s4] ss:$0 sm:$0xff]  ;;  %v285_v58 = vld [vmem:[#allocation8 + $0x78] sm:$0xff]  ;;  %v455_v60 = vld [vmem:[%s922_s4 + $0x1] ss:$0 sm:$0xff] }
  0x56   :  { %v639_v59 = vpack.c.bf16 %v285_v58, %v284_v57  ;;  %v456_v3 = vld [vmem:[%s922_s4 + $0x2] ss:$0 sm:$0xff]  ;;  %v457_v8 = vld [vmem:[%s923_s5] ss:$0 sm:$0xff]  ;;  %s782_s4 = smov [#allocation10]  }
  0x57   :  { %590 = vmatpush3.bf16.msra.mxu1 %v587_v13  ;;  %s441_s5 = sshll.u32 %s782_s4, 4  ;;  %s442_s5 = int_to_ptr.vmem [resolvable:$true] %s441_s5 }
  0x58   :  { %592 = vmatprep.subr.bf16.mxu1 %v591_v16  ;;  %618 = vmatpush3.bf16.msra.mxu0 %v615_v34  ;;  %s746_s27 = scalar_lea.vmem %s442_s5, 32  ;;  %p751_p5 = scmp.lt.s32.totalorder %s442_s5, %s442_s5 }
  0x59   :  { %620 = vmatprep.subr.bf16.mxu0 %v619_v37  ;;  %p747_p4 = scmp.ne.s32.totalorder %s442_s5, %s746_s27  ;;  %p752_p6 = scmp.lt.s32.totalorder %s746_s27, %s746_s27 }
  0x5b   :  { %594 = vmatpush3.bf16.msra.mxu1 %v591_v16  ;;  %p753_p7 = por %p752_p6, %p751_p5 }
  0x5c   :  { %596 = vmatprep.subr.bf16.mxu1 %v595_v19  ;;  %622 = vmatpush3.bf16.msra.mxu0 %v619_v37 }
  0x5d   :  { %624 = vmatprep.subr.bf16.mxu0 %v623_v40  ;;  %p754_p8 = pnand %p753_p7, %p747_p4 }
  0x5f   :  { %598 = vmatpush3.bf16.msra.mxu1 %v595_v19 }
  0x60   :  { %600 = vmatprep.subr.bf16.mxu1 %v599_v22  ;;  %626 = vmatpush3.bf16.msra.mxu0 %v623_v40 }
  0x61   :  { %628 = vmatprep.subr.bf16.mxu0 %v627_v43 }
  0x63   :  { %602 = vmatpush3.bf16.msra.mxu1 %v599_v22 }
  0x64   :  { %604 = vmatprep.subr.bf16.mxu1 %v603_v25  ;;  %630 = vmatpush3.bf16.msra.mxu0 %v627_v43 }
  0x65   :  { %632 = vmatprep.subr.bf16.mxu0 %v631_v46 }
  0x67   :  { %606 = vmatpush3.bf16.msra.mxu1 %v603_v25 }
  0x68   :  { %608 = vmatprep.subr.bf16.mxu1 %v607_v28  ;;  %634 = vmatpush3.bf16.msra.mxu0 %v631_v46 }
  0x69   :  { %636 = vmatprep.subr.bf16.mxu0 %v635_v49 }
  0x6b   :  { %610 = vmatpush3.bf16.msra.mxu1 %v607_v28 }
  0x6c   :  { %638 = vmatpush3.bf16.msra.mxu0 %v635_v49 }
  0x6d   :  { %640 = vmatprep.subr.bf16.mxu0 %v639_v59 }
  0x70   :  { %642 = vmatpush3.bf16.msra.mxu0 %v639_v59 }
 0x123   :  { %v504_v51 = vpop.f32.mrb[0].mxu0 }
 0x124   :  { %v167_v52 = vadd.f32 %v504_v51, %v452_v50  ;;  %v161_v53 = vpop.f32.mrb[1].mxu0 }
 0x125   :  { %v162_v54 = vadd.f32 %v452_v50, %v161_v53 }
 0x126   :  { %v171_v56 = vmax.f32 %v167_v52, 0.0 }
 0x127   :  { %v170_v55 = vmax.f32 %v162_v54, 0.0 }
 0x129   :  { %537 = vmatprep.mubr.f32.mxu1 %v170_v55 }
 0x12a   :  { %538 = vmatmul.mubr.f32.vlgmr.msra.gmra.mrb[0].mxu1 %v171_v56 }
 0x1fd   :  { %v539_v61 = vpop.f32.mrb[0].mxu1 }
 0x1fe   :  { %v265_v62 = vadd.f32 %v539_v61, %v455_v60  ;;  %v259_v63 = vpop.f32.mrb[1].mxu1 }
 0x1ff   :  { %v260_v0 = vadd.f32 %v455_v60, %v259_v63 }
 0x200   :  { %v269_v2 = vmax.f32 %v265_v62, 0.0 }
 0x201   :  { %v268_v1 = vmax.f32 %v260_v0, 0.0 }
 0x203   :  { %572 = vmatprep.mubr.f32.mxu0 %v268_v1 }
 0x204   :  { %573 = vmatmul.mubr.f32.vlgmr.msra.gmra.mrb[2].mxu0 %v269_v2 }
 0x2d7   :  { %v574_v4 = vpop.f32.mrb[2].mxu0 }
 0x2d8   :  { %v357_v5 = vpop.f32.mrb[3].mxu0  ;;  %v363_v6 = vadd.f32 %v574_v4, %v456_v3 }
 0x2d9   :  { %v358_v7 = vadd.f32 %v456_v3, %v357_v5 }
 0x2da   :  { %v367_v10 = vmax.f32 %v363_v6, 0.0 }
 0x2db   :  { %v366_v9 = vmax.f32 %v358_v7, 0.0 }
 0x2dc   :  { %v376_v12 = vmul.f32 %v457_v8, %v367_v10 }
 0x2dd   :  { %v375_v11 = vmul.f32 %v457_v8, %v366_v9 }
 0x2df   :  { %377 = vadd.xlane.f32.xlu0 %v375_v11 }
 0x2e3   :  { %379 = vadd.xlane.f32.xlu0 %v376_v12 }
 0x36c   :  { %v378_v13 = vpop.xlane.xlu0 %377 }
 0x36d   :  { %v381_v14 = vrot.slane %v378_v13, 4 }
 0x36f   :  { %v382_v15 = vmax.f32 %v378_v13, %v381_v14 }
 0x370   :  { %v380_v16 = vpop.xlane.xlu0 %379 }
 0x371   :  { %v383_v17 = vrot.slane %v382_v15, 2  ;;  %v387_v18 = vrot.slane %v380_v16, 4 }
 0x373   :  { %v384_v19 = vmax.f32 %v382_v15, %v383_v17  ;;  %v388_v20 = vmax.f32 %v380_v16, %v387_v18 }
 0x375   :  { %v385_v21 = vrot.slane %v384_v19, 1  ;;  %v389_v22 = vrot.slane %v388_v20, 2 }
 0x377   :  { %v386_v23 = vmax.f32 %v384_v19, %v385_v21  ;;  %v390_v24 = vmax.f32 %v388_v20, %v389_v22 }
 0x379   :  { %v393_v25 = vsub.f32 %v378_v13, %v386_v23  ;;  %v391_v26 = vrot.slane %v390_v24, 1 }
 0x37b   :  { %v395_v27 = vmul.f32 1.442695, %v393_v25  ;;  %v392_v28 = vmax.f32 %v390_v24, %v391_v26 }
 0x37d   :  { %650 = vpow2.f32 %v395_v27  ;;  %v394_v29 = vsub.f32 %v380_v16, %v392_v28 }
 0x37f   :  { %v397_v30 = vmul.f32 1.442695, %v394_v29 }
 0x381   :  { %652 = vpow2.f32 %v397_v30 }
 0x387   :  { %v651_v31 = vpop.eup %650 }
 0x388   :  { %v399_v32 = vrot.slane %v651_v31, 4 }
 0x38a   :  { %v400_v33 = vadd.f32 %v651_v31, %v399_v32 }
 0x38b   :  { %v653_v34 = vpop.eup %652 }
 0x38c   :  { %v405_v35 = vrot.slane %v653_v34, 4  ;;  %v401_v36 = vrot.slane %v400_v33, 2 }
 0x38e   :  { %v406_v37 = vadd.f32 %v653_v34, %v405_v35  ;;  %v402_v38 = vadd.f32 %v401_v36, %v400_v33 }
 0x390   :  { %v407_v39 = vrot.slane %v406_v37, 2  ;;  %v403_v40 = vrot.slane %v402_v38, 1 }
 0x392   :  { %v404_v41 = vadd.f32 %v403_v40, %v402_v38  ;;  %v408_v42 = vadd.f32 %v407_v39, %v406_v37 }
 0x394   :  { %v409_v43 = vrot.slane %v408_v42, 1  ;;  %654 = vrcp.f32 %v404_v41 }
 0x396   :  { %v410_v44 = vadd.f32 %v409_v43, %v408_v42 }
 0x398   :  { %656 = vrcp.f32 %v410_v44 }
 0x39e   :  { %v655_v45 = vpop.eup %654 }
 0x39f   :  { %v412_v46 = vmul.f32 %v655_v45, %v651_v31 }
 0x3a1   :  { %v415_v47 = vmul.f32 %v412_v46, %v366_v9 }
 0x3a2   :  { %v657_v48 = vpop.eup %656 }
 0x3a3   :  { %v414_v49 = vmul.f32 %v657_v48, %v653_v34  ;;  %v417_v50 = vrot.slane %v415_v47, 4 }
 0x3a5   :  { %v416_v51 = vmul.f32 %v414_v49, %v367_v10  ;;  %v418_v52 = vadd.f32 %v417_v50, %v415_v47 }
 0x3a7   :  { %v419_v53 = vrot.slane %v418_v52, 2  ;;  %v423_v54 = vrot.slane %v416_v51, 4 }
 0x3a9   :  { %v420_v55 = vadd.f32 %v419_v53, %v418_v52  ;;  %v424_v56 = vadd.f32 %v423_v54, %v416_v51 }
 0x3ab   :  { %v425_v57 = vrot.slane %v424_v56, 2  ;;  %v421_v58 = vrot.slane %v420_v55, 1 }
 0x3ad   :  { %v426_v59 = vadd.f32 %v425_v57, %v424_v56  ;;  %v422_v61 = vadd.f32 %v421_v58, %v420_v55 }
 0x3af   :  { %v427_v60 = vrot.slane %v426_v59, 1 }
 0x3b1   :  { %v428_v62 = vadd.f32 %v427_v60, %v426_v59 }
 0x3b3   :  { %v432_v63 = vsel %vm431_vm1, %v428_v62, %v422_v61 }
 0x3b4   :  { %434 = vst [vmem:[#allocation10] sm:$0x3] %v432_v63 }
 0x3b5   :  { %757 = shalt.err (!%p754_p8)
}
 0x3b6   :  { %s758_s30 = scalar_lea.hbm %s924_s6, 32 }
 0x3b7   :  { %p759_p9 = scmp.ne.s32.totalorder %s924_s6, %s758_s30  ;;  %p762_p10 = scmp.lt.u32.totalorder %s758_s30, %s924_s6 }
 0x3b9   :  { %p764_p11 = pnand %p762_p10, %p759_p9 }
 0x3bb   :  { %767 = shalt.err (!%p764_p11)
}
 0x3bc   :  { %444 = dma.vmem_to_hbm [thread:$0]  %s442_s5, 32, %s924_s6, [#allocation4]  }
 0x3bd   :  { %774 = dma.done.wait [#allocation4], 32  }
 0x3be   :  { %775 = vsyncadd [#allocation4], 4294967264 }
 0x3bf   :  { %448 = vsyncpa [#allocation3], 1 }
 0x3c0   :  { %449 = vsyncpa [#allocation6], 1 }
 0x3c1   :  { %450 = vsyncpa [#allocation9], 1 }
 0x3c2   :  { %451 = vsyncpa [#allocation4], 1 }

</bundles_post_ra>
